<compile_context>
chip_gen: v7x
topology: tpu7x:2x2x1
jax: 0.10.0
libtpu: 0.0.40
codegen_flags: <defaults>
</compile_context>

<pallas_src>
import numpy as np
import jax
import jax.numpy as jnp
from jax.experimental import pallas as pl
from jax.experimental.pallas import tpu as pltpu

_TWO_PI = np.float32(2.0 * np.pi)


def _gfp_kernel(x_ref, w_ref, o_ref):
    # x_ref: (TB, 1)    float32 VMEM  (batch tile of timesteps)
    # w_ref: (1, H)     float32 VMEM  (frozen Gaussian projection row)
    # o_ref: (TB, 2*H)  out dtype     ([sin | cos] along lanes)
    half = w_ref.shape[1]
    # Exact reference association order: (x[:,None] * W[None,:]) * 2*pi.
    proj = (x_ref[...] * w_ref[...]) * _TWO_PI          # (TB, H) via broadcast
    # Direct slice stores into each half — no concatenated temporary.
    o_ref[:, :half] = jnp.sin(proj).astype(o_ref.dtype)
    o_ref[:, half:] = jnp.cos(proj).astype(o_ref.dtype)


def _round_up(v, m):
    return -(-v // m) * m


def gaussian_fourier_projection(x, W, *, out_dtype=jnp.float32,
                                vmem_block_budget_bytes=16 * 1024 * 1024):
    """x: (B,) timesteps, W: (embed_dim//2,) frozen weights.

    Returns (B, embed_dim) = concat([sin(x*W*2pi), cos(x*W*2pi)], axis=-1),
    matching the PyTorch module's forward (computed in f32, cast to out_dtype).
    """
    B = int(x.shape[0])
    half = int(W.shape[0])
    out_width = 2 * half
    out_el_bytes = np.dtype(out_dtype).itemsize

    # Per-row VMEM bytes of one buffer set: output tile + lane-padded x tile
    # ((TB,1) f32 pads to 128 lanes in VMEM -> 512 B/row). W tile is tiny.
    bytes_per_row = out_width * out_el_bytes + 128 * 4

    # Double-buffered footprint <= budget -> row tile size (multiple of 8).
    tb_budget = max(8, (vmem_block_budget_bytes // (2 * bytes_per_row) // 8) * 8)
    TB = min(tb_budget, _round_up(B, 8))

    # Keep >= 4 grid steps when the batch is big enough (v7x megacore + pipeline).
    n_blocks = pl.cdiv(B, TB)
    if n_blocks < 4 and B >= 4 * 8:
        TB = min(TB, _round_up(pl.cdiv(B, 4), 8))

    grid = (pl.cdiv(B, TB),)

    # VMEM limit consistent with the computed footprint; safe on v5e/v6e/v7x.
    vmem_limit = int(min(64 * 1024 * 1024,
                         max(32 * 1024 * 1024, 2 * vmem_block_budget_bytes)))

    x2 = x.astype(jnp.float32).reshape(B, 1)
    w2 = W.astype(jnp.float32).reshape(1, half)

    out = pl.pallas_call(
        _gfp_kernel,
        out_shape=jax.ShapeDtypeStruct((B, out_width), out_dtype),
        grid_spec=pltpu.PrefetchScalarGridSpec(
            num_scalar_prefetch=0,
            grid=grid,
            in_specs=[
                pl.BlockSpec((TB, 1), lambda i: (i, 0)),      # batch row tile
                pl.BlockSpec((1, half), lambda i: (0, 0)),    # whole W, reused
            ],
            # Ragged boundary block (B % TB != 0) is masked by Pallas — no
            # wrapper-side pad/slice round trip through HBM.
            out_specs=pl.BlockSpec((TB, out_width), lambda i: (i, 0)),
        ),
        compiler_params=pltpu.CompilerParams(
            # Independent row tiles -> megacore sharding on v7x, pipelining on all.
            dimension_semantics=("parallel",),
            vmem_limit_bytes=vmem_limit,
        ),
    )(x2, w2)
    return out


if __name__ == "__main__":
    key = jax.random.PRNGKey(0)
    k_w, k_x = jax.random.split(key)

    embed_dim = 64
    scale = 30.0
    batch = 8

    # Deterministic frozen parameter: W = randn(embed_dim // 2) * scale
    W = jax.random.normal(k_w, (embed_dim // 2,), dtype=jnp.float32) * scale
    # Example time-step inputs
    x = jax.random.uniform(k_x, (batch,), dtype=jnp.float32)

    out = gaussian_fourier_projection(x, W)
    out = jax.block_until_ready(out)

    # Reference check (plain JAX, same math / association order as torch forward)
    x_proj = x[:, None] * W[None, :] * (2.0 * np.pi)
    ref = jnp.concatenate([jnp.sin(x_proj), jnp.cos(x_proj)], axis=-1)
    assert out.shape == (batch, embed_dim)
    # With phases of O(100), f32 sin/cos carry a few-1e-5 intrinsic ambiguity.
    np.testing.assert_allclose(np.asarray(out), np.asarray(ref),
                               rtol=1e-4, atol=1e-4)

    print("KERNEL_OK")
</pallas_src>

<mosaic_0001>
module attributes {stable_mosaic.version = 11 : i64} {
  func.func @_gfp_kernel(%arg0: i32, %arg1: memref<8x1xf32, #tpu.memory_space<vmem>>, %arg2: memref<1x32xf32, #tpu.memory_space<vmem>>, %arg3: memref<8x64xf32, #tpu.memory_space<vmem>>) attributes {dimension_semantics = [#tpu.dimension_semantics<parallel>], iteration_bounds = array<i64: 1>, scalar_prefetch = 0 : i64, scratch_operands = 0 : i64, tpu.core_type = #tpu.core_type<tc>, window_params = [{transform_indices = @transform_0, window_bounds = array<i64: 8, 1>}, {pipeline_mode = #tpu.pipeline_mode<synchronous>, transform_indices = @transform_1, window_bounds = array<i64: 1, 32>}, {transform_indices = @transform_2, window_bounds = array<i64: 8, 64>}]} {
    %c0 = arith.constant 0 : index
    %c0_0 = arith.constant 0 : index
    %0 = vector.load %arg1[%c0, %c0_0] : memref<8x1xf32, #tpu.memory_space<vmem>>, vector<8x1xf32>
    %c0_1 = arith.constant 0 : index
    %c0_2 = arith.constant 0 : index
    %1 = vector.load %arg2[%c0_1, %c0_2] : memref<1x32xf32, #tpu.memory_space<vmem>>, vector<1x32xf32>
    %2 = vector.broadcast %0 : vector<8x1xf32> to vector<8x32xf32>
    %3 = vector.broadcast %1 : vector<1x32xf32> to vector<8x32xf32>
    %4 = arith.mulf %2, %3 : vector<8x32xf32>
    %cst = arith.constant 6.28318548 : f32
    %5 = vector.broadcast %cst : f32 to vector<8x32xf32>
    %6 = arith.mulf %4, %5 : vector<8x32xf32>
    %7 = math.sin %6 : vector<8x32xf32>
    %c0_3 = arith.constant 0 : index
    %c0_4 = arith.constant 0 : index
    %8 = vector.load %arg3[%c0_3, %c0_4] : memref<8x64xf32, #tpu.memory_space<vmem>>, vector<8x32xf32>
    tpu.vector_store %arg3[%c0_3, %c0_4], %7 {strides = array<i32>} : memref<8x64xf32, #tpu.memory_space<vmem>>, vector<8x32xf32>,
    %9 = math.cos %6 : vector<8x32xf32>
    %c0_5 = arith.constant 0 : index
    %c32 = arith.constant 32 : index
    %10 = vector.load %arg3[%c0_5, %c32] : memref<8x64xf32, #tpu.memory_space<vmem>>, vector<8x32xf32>
    tpu.vector_store %arg3[%c0_5, %c32], %9 {strides = array<i32>} : memref<8x64xf32, #tpu.memory_space<vmem>>, vector<8x32xf32>,
    return
  }
  func.func @transform_0(%arg0: i32) -> (i32, i32) {
    %c0_i32 = arith.constant 0 : i32
    %c0_i32_0 = arith.constant 0 : i32
    return %arg0, %c0_i32 : i32, i32
  }
  func.func @transform_1(%arg0: i32) -> (i32, i32) {
    %c0_i32 = arith.constant 0 : i32
    %c0_i32_0 = arith.constant 0 : i32
    %c0_i32_1 = arith.constant 0 : i32
    return %c0_i32, %c0_i32_0 : i32, i32
  }
  func.func @transform_2(%arg0: i32) -> (i32, i32) {
    %c0_i32 = arith.constant 0 : i32
    %c0_i32_0 = arith.constant 0 : i32
    return %arg0, %c0_i32 : i32, i32
  }
}

</mosaic_0001>

<bundles_post_ra>
// kernel: tpu_custom_call.1
= control target key start
LH: loop header
LB: loop body
LE: loop exit
PB: predicated region body
PF: predicated region fallthrough
CT: control target
= control target key end

     0   :  { %v307_v1 = vmov 0   ;;  %s371_s0 = inlined_call_operand.vmem [shape: f32[8,1], index: 0, kind: input, shape index: {}]   ;;  %s372_s1 = inlined_call_operand.vmem [shape: f32[1,32], index: 1, kind: input, shape index: {}]   ;;  %s373_s2 = inlined_call_operand.hbm [shape: f32[8,64], index: 2, kind: output, shape index: {}]  }
   0x1   :  { %v12_v0 = vld [vmem:[%s371_s0] sm:$0xff]  ;;  %278 = vset.pattern.permute.xlu0 %v307_v1 }
   0x2   :  { %7 = vsyncpa [#allocation3], 0  ;;  %16 = vperm.xlu0 %278, %v12_v0   ;;  %v256_v2 = vld [vmem:[%s372_s1] ss:$0 sm:$0xff]  ;;  %v308_v17 = vmov 2102212464  }
   0x3   :  { %v309_v19 = vmov 920167782   ;;  %v310_v23 = vmov 1326507024   ;;  %v311_v25 = vmov 683565275  }
   0x4   :  { %v312_v27 = vmov 2475754826   ;;  %v313_v30 = vmov 2131351028   ;;  %vm131_vm11 = vcmask 261120   ;;  %s314_s0 = smov 32  }
   0x5   :  { %s315_s1 = smov [#allocation2]  }
   0x6   :  { %s248_s13 = sshll.u32 %s315_s1, 4  ;;  %s249_s13 = int_to_ptr.vmem [resolvable:$true] %s248_s13 }
   0x7   :  { %s283_s14 = scalar_lea.vmem %s249_s13, 128  ;;  %p288_p1 = scmp.lt.s32.totalorder %s249_s13, %s249_s13 }
   0x8   :  { %p284_p0 = scmp.ne.s32.totalorder %s249_s13, %s283_s14  ;;  %p289_p2 = scmp.lt.s32.totalorder %s283_s14, %s283_s14 }
   0xa   :  { %p290_p3 = por %p289_p2, %p288_p1 }
   0xc   :  { %p291_p4 = pnand %p290_p3, %p284_p0 }
  0x81   :  { %v17_v3 = vpop.permute.xlu0 %16 }
  0x82   :  { %v25_v4 = vmul.f32 %v256_v2, %v17_v3 }
  0x84   :  { %v337_v5 = vmul.f32 6.2831855, %v25_v4 }
  0x86   :  { %v30_v6 = vand.u32 2139095040, %v337_v5  ;;  %v27_v7 = vand.u32 2147483647, %v337_v5  ;;  %vm29_vm7 = vcmp.lt.s32.totalorder %v337_v5, 0 }
  0x88   :  { %v31_v8 = vshrl.u32 %v30_v6, 23  ;;  %v34_v10 = vand.u32 8388607, %v27_v7  ;;  %vm28_vm8 = vcmp.le.f32.partialorder %v27_v7, 0.7853982 }
  0x8a   :  { %v257_v9 = vadd.s32 4294967169, %v31_v8  ;;  %v35_v13 = vor.u32 8388608, %v34_v10 }
  0x8c   :  { %v37_v11 = vadd.s32 1, %v257_v9  ;;  %v75_v21 = vshll.u32 %v35_v13, 8 }
  0x8e   :  { %vm38_vm0 = vcmp.gt.s32.totalorder %v37_v11, 0 }
  0x8f   :  { %v39_v12 = vsel %vm38_vm0, %v37_v11, 0  ;;  %vm119_vm0 = vweird.f32 %v337_v5 }
  0x90   :  { %v41_v14 = vand.u32 31, %v39_v12  ;;  %v40_v15 = vshrl.u32 %v39_v12, 5 }
  0x92   :  { %v42_v16 = vsub.s32 32, %v41_v14  ;;  %v53_v18 = vshll.u32 %v308_v17, %v41_v14  ;;  %v56_v20 = vshll.u32 %v309_v19, %v41_v14  ;;  %v44_v26 = vshll.u32 %v311_v25, %v41_v14 }
  0x93   :  { %v47_v29 = vshll.u32 %v312_v27, %v41_v14  ;;  %v50_v32 = vshll.u32 %v313_v30, %v41_v14  ;;  %vm62_vm1 = vcmp.lt.s32.totalorder %v40_v15, 4  ;;  %vm59_vm2 = vcmp.lt.s32.totalorder %v40_v15, 1 }
  0x94   :  { %v54_v22 = vshrl.u32 %v309_v19, %v42_v16  ;;  %v57_v24 = vshrl.u32 %v310_v23, %v42_v16  ;;  %v45_v28 = vshrl.u32 %v312_v27, %v42_v16  ;;  %v48_v31 = vshrl.u32 %v313_v30, %v42_v16 }
  0x95   :  { %v51_v33 = vshrl.u32 %v308_v17, %v42_v16  ;;  %v43_v37 = vshrl.u32 %v311_v25, %v42_v16  ;;  %vm60_vm3 = vcmp.lt.s32.totalorder %v40_v15, 2  ;;  %vm61_vm4 = vcmp.lt.s32.totalorder %v40_v15, 3 }
  0x96   :  { %v55_v34 = vor.u32 %v54_v22, %v53_v18  ;;  %v58_v35 = vor.u32 %v57_v24, %v56_v20  ;;  %v46_v36 = vor.u32 %v45_v28, %v44_v26  ;;  %v49_v38 = vor.u32 %v48_v31, %v47_v29 }
  0x97   :  { %v52_v39 = vor.u32 %v51_v33, %v50_v32 }
  0x98   :  { %v68_v40 = vsel %vm62_vm1, %v55_v34, 920167782  ;;  %v72_v41 = vsel %vm62_vm1, %v58_v35, 1326507024  ;;  %v67_v43 = vsel %vm59_vm2, %v46_v36, %v49_v38  ;;  %v63_v46 = vsel %vm59_vm2, %v43_v37, %v46_v36 }
  0x99   :  { %v64_v42 = vsel %vm62_vm1, %v52_v39, 2102212464  ;;  %v69_v44 = vsel %vm61_vm4, %v52_v39, %v68_v40  ;;  %v71_v45 = vsel %vm59_vm2, %v49_v38, %v52_v39  ;;  %v73_v49 = vsel %vm61_vm4, %v55_v34, %v72_v41 }
  0x9a   :  { %v65_v47 = vsel %vm61_vm4, %v49_v38, %v64_v42  ;;  %v70_v48 = vsel %vm60_vm3, %v67_v43, %v69_v44  ;;  %v74_v50 = vsel %vm60_vm3, %v71_v45, %v73_v49  ;;  %vm240_vm1 = vcmask 523520  }
  0x9b   :  { %v343_v51 = vmul.u32.u64.low %v75_v21, %v70_v48  ;;  %v344_v52 = vmul.u32.u64.high %v75_v21, %v70_v48, %v343_v51  ;;  %v346_v53 = vmul.u32.u64.low %v75_v21, %v74_v50  ;;  %v347_v54 = vmul.u32.u64.high %v75_v21, %v74_v50, %v346_v53 }
  0x9c   :  { %v66_v55 = vsel %vm60_vm3, %v63_v46, %v65_v47 }
  0x9d   :  { %v85_v56 = vadd.s32 1, %v344_v52  ;;  %v82_v57 = vmul.u32 %v75_v21, %v66_v55  ;;  %vm84_vm5 = vc.u32 %v347_v54, %v343_v51  ;;  %v83_v6 = vadd.s32 %v343_v51, %v347_v54 }
  0x9f   :  { %v86_v58 = vsel %vm84_vm5, %v85_v56, %v344_v52 }
  0xa0   :  { %v87_v59 = vadd.s32 %v86_v58, %v82_v57 }
  0xa2   :  { %v88_v60 = vadd.s32 536870912, %v87_v59 }
  0xa4   :  { %v89_v61 = vshrl.u32 %v88_v60, 30 }
  0xa6   :  { %v90_v62 = vshll.u32 %v89_v61, 30  ;;  %v113_v19 = vsub.s32 4, %v89_v61 }
  0xa8   :  { %v91_v63 = vsub.s32 %v87_v59, %v90_v62  ;;  %v114_v22 = vsel %vm29_vm7, %v113_v19, %v89_v61 }
  0xa9   :  { %v116_v24 = vsel %vm28_vm8, 0, %v114_v22 }
  0xaa   :  { %v93_v0 = vsub.s32 0, %v91_v63  ;;  %v120_v25 = vadd.s32 3, %v116_v24  ;;  %v226_v27 = vand.u32 3, %v116_v24 }
  0xac   :  { %v258_v1 = vmin.u32 %v93_v0, %v91_v63  ;;  %v121_v26 = vand.u32 3, %v120_v25  ;;  %vm231_vm10 = vcmp.eq.s32.totalorder %v226_v27, 2  ;;  %vm228_vm13 = vcmp.eq.s32.totalorder %v226_v27, 0 }
  0xad   :  { %vm227_vm15 = vcmp.lt.s32.totalorder %v226_v27, 2 }
  0xae   :  { %v95_v2 = vclz %v258_v1  ;;  %vm126_vm9 = vcmp.eq.s32.totalorder %v121_v26, 2  ;;  %vm123_vm12 = vcmp.eq.s32.totalorder %v121_v26, 0  ;;  %vm122_vm14 = vcmp.lt.s32.totalorder %v121_v26, 2 }
  0xb0   :  { %v259_v3 = vadd.s32 4294967294, %v95_v2 }
  0xb2   :  { %vm260_vm6 = vcmp.lt.s32.totalorder %v259_v3, 0 }
  0xb3   :  { %v98_v4 = vsel %vm260_vm6, 0, %v259_v3 }
  0xb4   :  { %v99_v8 = vsub.s32 32, %v98_v4  ;;  %v103_v9 = vsub.s32 4294967266, %v98_v4  ;;  %v100_v10 = vshll.u32 %v91_v63, %v98_v4 }
  0xb6   :  { %v101_v11 = vshrl.u32 %v83_v6, %v99_v8  ;;  %v104_v12 = vadd.s32 127, %v103_v9 }
  0xb8   :  { %v102_v13 = vor.u32 %v101_v11, %v100_v10  ;;  %v105_v14 = vshll.u32 %v104_v12, 23 }
  0xba   :  { %v106_v15 = vor.u32 4788187, %v105_v14  ;;  %v109_v17 = vcvt.s32.f32 %v102_v13 }
  0xbc   :  { %v107_v16 = vand.u32 2147483647, %v106_v15 }
  0xbe   :  { %v110_v18 = vmul.f32 %v109_v17, %v107_v16 }
  0xc0   :  { %v111_v20 = vxor.u32 2147483648, %v110_v18 }
  0xc2   :  { %v112_v21 = vsel %vm29_vm7, %v111_v20, %v110_v18 }
  0xc3   :  { %v115_v23 = vsel %vm28_vm8, %v337_v5, %v112_v21 }
  0xc4   :  { %279 = vcosq.f32 %v115_v23 }
  0xc5   :  { %281 = vsinq.f32 %v115_v23 }
  0xce   :  { %v280_v28 = vpop.eup %279 }
  0xcf   :  { %v282_v29 = vpop.eup %281  ;;  %v127_v30 = vxor.u32 2147483648, %v280_v28 }
  0xd0   :  { %v124_v31 = vxor.u32 2147483648, %v282_v29 }
  0xd1   :  { %v233_v7 = vsel %vm231_vm10, %v127_v30, %v282_v29  ;;  %v128_v32 = vsel %vm126_vm9, %v127_v30, %v282_v29 }
  0xd2   :  { %v230_v33 = vsel %vm228_vm13, %v280_v28, %v124_v31  ;;  %v125_v34 = vsel %vm123_vm12, %v280_v28, %v124_v31 }
  0xd3   :  { %v234_v35 = vsel %vm227_vm15, %v230_v33, %v233_v7  ;;  %v129_v36 = vsel %vm122_vm14, %v125_v34, %v128_v32 }
  0xd4   :  { %v235_v37 = vsel %vm119_vm0, nan, %v234_v35  ;;  %v130_v38 = vsel %vm119_vm0, nan, %v129_v36 }
  0xd5   :  { %237 = vrot.lane.b32.xlu0 %v235_v37, %s314_s0  ;;  %132 = vst.msk [vmem:[#allocation2] sm:$0xff] %vm131_vm11, %v130_v38 }
 0x147   :  { %v238_v39 = vpop.permute.xlu0 %237 }
 0x148   :  { %241 = vst.msk [vmem:[#allocation2] sm:$0xff] %vm240_vm1, %v238_v39 }
 0x149   :  { %294 = shalt.err (!%p291_p4)
}
 0x14a   :  { %s295_s17 = scalar_lea.hbm %s373_s2, 128 }
 0x14b   :  { %p296_p5 = scmp.ne.s32.totalorder %s373_s2, %s295_s17  ;;  %p299_p6 = scmp.lt.u32.totalorder %s295_s17, %s373_s2 }
 0x14d   :  { %p301_p7 = pnand %p299_p6, %p296_p5 }
 0x14f   :  { %304 = shalt.err (!%p301_p7)
}
 0x150   :  { %251 = dma.vmem_to_hbm [thread:$0]  %s249_s13, 128, %s373_s2, [#allocation3]  }
 0x151   :  { %305 = dma.done.wait [#allocation3], 128  }
 0x152   :  { %306 = vsyncadd [#allocation3], 4294967168 }
 0x153   :  { %255 = vsyncpa [#allocation3], 1 }

</bundles_post_ra>
